<compile_context>
chip_gen: v7x
topology: tpu7x:2x2x1
jax: 0.10.0
libtpu: 0.0.40
codegen_flags: <defaults>
</compile_context>

<pallas_src>
import jax
import jax.numpy as jnp
from jax.experimental import pallas as pl
from jax.experimental.pallas import tpu as pltpu


def _score_kernel(emb_ref, we_ref, hb_ref, ws_ref, out_ref):
    # emb_ref: (1, TL, I)  embedding tile (compute dtype)
    # we_ref:  (I, H)      transposed embedding half of the attn weight
    # hb_ref:  (1, 1, H)   precomputed hidden @ W_h^T + b_attn   (f32)
    # ws_ref:  (1, H)      score weight row (f32)
    # out_ref: (1, 1, TL)  lane-dense scores (f32)
    emb = emb_ref[0]                                                    # (TL, I)
    pre = jnp.dot(emb, we_ref[...], preferred_element_type=jnp.float32)  # (TL, H) MXU, f32 acc
    h = jnp.tanh(pre + hb_ref[0])                                       # (TL, H) f32 (EUP tanh)
    # score Linear (H -> 1, no bias): VPU multiply + cross-lane sum instead of an N=1 matmul.
    s = jnp.sum(h * ws_ref[...], axis=-1, keepdims=True)                # (TL, 1)
    out_ref[0] = jnp.transpose(s)                                       # (1, TL) lane-dense store


def score_forward(hidden, num_embeddings, w_attn, b_attn, w_score, num_mask=None,
                  *, max_tile_l=512, compute_dtype=None):
    """Pallas implementation of Score.forward.

    hidden:         (B, 1, H)
    num_embeddings: (B, L, I)
    w_attn:         (H, H+I)   torch Linear weight (out, in)  -- cat order is (hidden, emb)
    b_attn:         (H,)
    w_score:        (1, H)     torch Linear weight, no bias
    num_mask:       optional (B, L) bool (True -> masked with -1e12)
    returns:        (B, L) float32 scores

    compute_dtype: dtype fed to the MXU for emb/W_e (e.g. jnp.bfloat16 on v6e/v7x);
    accumulation, tanh and the score reduction stay in f32.
    """
    B, L, I = num_embeddings.shape
    H = hidden.shape[-1]
    dt = compute_dtype if compute_dtype is not None else num_embeddings.dtype

    # Split the attn weight: columns [0:H] act on hidden, [H:H+I] act on the embeddings.
    w_h = jnp.asarray(w_attn[:, :H], jnp.float32)    # (H, H)
    w_e = jnp.asarray(w_attn[:, H:], dt)             # (H, I)

    # Precompute the (tiny) hidden contribution once per batch row: (B, H) in f32.
    hb = (jnp.einsum('bh,oh->bo', hidden[:, 0, :].astype(jnp.float32), w_h)
          + jnp.asarray(b_attn, jnp.float32))
    hb = hb.reshape(B, 1, H)

    we_t = w_e.T                                               # (I, H)
    ws = jnp.asarray(w_score, jnp.float32).reshape(1, H)       # (1, H)

    # L tiling: single full-row tile when it fits; otherwise 512-wide tiles (mult of 128)
    # with zero padding (padded scores are sliced off below).
    if L <= max_tile_l:
        tile_l = L
        l_pad = L
        emb = num_embeddings.astype(dt)
    else:
        tile_l = max_tile_l
        l_pad = ((L + tile_l - 1) // tile_l) * tile_l
        emb = jnp.pad(num_embeddings, ((0, 0), (0, l_pad - L), (0, 0))).astype(dt)

    grid = (B, l_pad // tile_l)

    # NOTE: for very large H / I, the (I, H) weight block should additionally be tiled
    # along K/N with a VMEM accumulator; not needed at these sizes.
    out = pl.pallas_call(
        _score_kernel,
        out_shape=jax.ShapeDtypeStruct((B, 1, l_pad), jnp.float32),
        grid_spec=pltpu.PrefetchScalarGridSpec(
            num_scalar_prefetch=0,
            grid=grid,
            in_specs=[
                pl.BlockSpec((1, tile_l, I), lambda b, l: (b, l, 0)),   # embedding tile
                pl.BlockSpec((I, H), lambda b, l: (0, 0)),              # W_e^T (resident)
                pl.BlockSpec((1, 1, H), lambda b, l: (b, 0, 0)),        # hidden@W_h^T + bias
                pl.BlockSpec((1, H), lambda b, l: (0, 0)),              # score weight row
            ],
            out_specs=pl.BlockSpec((1, 1, tile_l), lambda b, l: (b, 0, l)),
        ),
        compiler_params=pltpu.CompilerParams(
            dimension_semantics=("parallel", "parallel")),
    )(emb, we_t, hb, ws)

    score = out.reshape(B, l_pad)[:, :L]
    if num_mask is not None:
        score = jnp.where(num_mask, jnp.float32(-1e12), score)
    return score


def score_reference(hidden, num_embeddings, w_attn, b_attn, w_score, num_mask=None):
    B, L, I = num_embeddings.shape
    H = hidden.shape[-1]
    hidden_rep = jnp.broadcast_to(hidden, (B, L, H))
    x = jnp.concatenate([hidden_rep, num_embeddings], axis=2).reshape(B * L, H + I)
    s = jnp.tanh(x @ w_attn.T + b_attn) @ w_score.T  # (M, 1)
    s = s.reshape(B, L)
    if num_mask is not None:
        s = jnp.where(num_mask, -1e12, s)
    return s


if __name__ == "__main__":
    key = jax.random.PRNGKey(0)
    B, L = 2, 8
    input_size, hidden_size = 32, 32
    D = input_size + hidden_size

    k1, k2, k3, k4, k5, k6 = jax.random.split(key, 6)
    hidden = jax.random.normal(k1, (B, 1, hidden_size), jnp.float32)
    num_embeddings = jax.random.normal(k2, (B, L, input_size), jnp.float32)

    # deterministic parameter init (matching torch Linear shapes)
    bound_attn = 1.0 / (D ** 0.5)
    w_attn = jax.random.uniform(k3, (hidden_size, D), jnp.float32,
                                -bound_attn, bound_attn)
    b_attn = jax.random.uniform(k4, (hidden_size,), jnp.float32,
                                -bound_attn, bound_attn)
    bound_score = 1.0 / (hidden_size ** 0.5)
    w_score = jax.random.uniform(k5, (1, hidden_size), jnp.float32,
                                 -bound_score, bound_score)

    num_mask = jax.random.bernoulli(k6, 0.25, (B, L))

    out = score_forward(hidden, num_embeddings, w_attn, b_attn, w_score, num_mask)
    out = jax.block_until_ready(out)

    ref = score_reference(hidden, num_embeddings, w_attn, b_attn, w_score, num_mask)
    assert out.shape == (B, L)
    assert jnp.allclose(out, ref, atol=1e-5, rtol=1e-5), (out, ref)

    print("KERNEL_OK")
</pallas_src>

<mosaic_0001>
module attributes {stable_mosaic.version = 11 : i64} {
  func.func @_score_kernel(%arg0: i32, %arg1: i32, %arg2: memref<1x8x32xf32, #tpu.memory_space<vmem>>, %arg3: memref<32x32xf32, #tpu.memory_space<vmem>>, %arg4: memref<1x1x32xf32, #tpu.memory_space<vmem>>, %arg5: memref<1x32xf32, #tpu.memory_space<vmem>>, %arg6: memref<1x1x8xf32, #tpu.memory_space<vmem>>) attributes {dimension_semantics = [#tpu.dimension_semantics<parallel>, #tpu.dimension_semantics<parallel>], iteration_bounds = array<i64: 2, 1>, scalar_prefetch = 0 : i64, scratch_operands = 0 : i64, tpu.core_type = #tpu.core_type<tc>, window_params = [{transform_indices = @transform_0, window_bounds = array<i64: 1, 8, 32>}, {pipeline_mode = #tpu.pipeline_mode<synchronous>, transform_indices = @transform_1, window_bounds = array<i64: 32, 32>}, {transform_indices = @transform_2, window_bounds = array<i64: 1, 1, 32>}, {pipeline_mode = #tpu.pipeline_mode<synchronous>, transform_indices = @transform_3, window_bounds = array<i64: 1, 32>}, {transform_indices = @transform_4, window_bounds = array<i64: 1, 1, 8>}]} {
    %c0 = arith.constant 0 : index
    %c0_0 = arith.constant 0 : index
    %c0_1 = arith.constant 0 : index
    %0 = vector.load %arg2[%c0, %c0_0, %c0_1] : memref<1x8x32xf32, #tpu.memory_space<vmem>>, vector<1x8x32xf32>
    %1 = vector.shape_cast %0 : vector<1x8x32xf32> to vector<8x32xf32>
    %c0_2 = arith.constant 0 : index
    %c0_3 = arith.constant 0 : index
    %2 = vector.load %arg3[%c0_2, %c0_3] : memref<32x32xf32, #tpu.memory_space<vmem>>, vector<32x32xf32>
    %cst = arith.constant dense<0.000000e+00> : vector<8x32xf32>
    %3 = tpu.matmul %1, %2, %cst {dimension_numbers = #tpu.dot_dimension_numbers<[1], [0], [0], [1], [0, 0, 1, 1], [], []>} : vector<8x32xf32>, vector<32x32xf32>, vector<8x32xf32> -> vector<8x32xf32>
    %c0_4 = arith.constant 0 : index
    %c0_5 = arith.constant 0 : index
    %c0_6 = arith.constant 0 : index
    %4 = vector.load %arg4[%c0_4, %c0_5, %c0_6] : memref<1x1x32xf32, #tpu.memory_space<vmem>>, vector<1x1x32xf32>
    %5 = vector.shape_cast %4 : vector<1x1x32xf32> to vector<1x32xf32>
    %6 = vector.broadcast %5 : vector<1x32xf32> to vector<8x32xf32>
    %7 = arith.addf %3, %6 : vector<8x32xf32>
    %8 = math.tanh %7 : vector<8x32xf32>
    %c0_7 = arith.constant 0 : index
    %c0_8 = arith.constant 0 : index
    %9 = vector.load %arg5[%c0_7, %c0_8] : memref<1x32xf32, #tpu.memory_space<vmem>>, vector<1x32xf32>
    %10 = vector.broadcast %9 : vector<1x32xf32> to vector<8x32xf32>
    %11 = arith.mulf %8, %10 : vector<8x32xf32>
    %cst_9 = arith.constant dense<0.000000e+00> : vector<8xf32>
    %12 = vector.multi_reduction <add>, %11, %cst_9 [1] : vector<8x32xf32> to vector<8xf32>
    %13 = vector.shape_cast %12 : vector<8xf32> to vector<8x1xf32>
    %14 = tpu.transpose %13, [1, 0] : vector<8x1xf32> -> vector<1x8xf32>
    %c0_10 = arith.constant 0 : index
    %c0_11 = arith.constant 0 : index
    %c0_12 = arith.constant 0 : index
    %15 = vector.load %arg6[%c0_10, %c0_11, %c0_12] : memref<1x1x8xf32, #tpu.memory_space<vmem>>, vector<1x1x8xf32>
    %16 = vector.shape_cast %15 : vector<1x1x8xf32> to vector<1x8xf32>
    %17 = vector.shape_cast %14 : vector<1x8xf32> to vector<1x1x8xf32>
    tpu.vector_store %arg6[%c0_10, %c0_11, %c0_12], %17 {strides = array<i32>} : memref<1x1x8xf32, #tpu.memory_space<vmem>>, vector<1x1x8xf32>,
    return
  }
  func.func @transform_0(%arg0: i32, %arg1: i32) -> (i32, i32, i32) {
    %c0_i32 = arith.constant 0 : i32
    %c0_i32_0 = arith.constant 0 : i32
    return %arg0, %arg1, %c0_i32 : i32, i32, i32
  }
  func.func @transform_1(%arg0: i32, %arg1: i32) -> (i32, i32) {
    %c0_i32 = arith.constant 0 : i32
    %c0_i32_0 = arith.constant 0 : i32
    %c0_i32_1 = arith.constant 0 : i32
    return %c0_i32, %c0_i32_0 : i32, i32
  }
  func.func @transform_2(%arg0: i32, %arg1: i32) -> (i32, i32, i32) {
    %c0_i32 = arith.constant 0 : i32
    %c0_i32_0 = arith.constant 0 : i32
    %c0_i32_1 = arith.constant 0 : i32
    return %arg0, %c0_i32, %c0_i32_0 : i32, i32, i32
  }
  func.func @transform_3(%arg0: i32, %arg1: i32) -> (i32, i32) {
    %c0_i32 = arith.constant 0 : i32
    %c0_i32_0 = arith.constant 0 : i32
    %c0_i32_1 = arith.constant 0 : i32
    return %c0_i32, %c0_i32_0 : i32, i32
  }
  func.func @transform_4(%arg0: i32, %arg1: i32) -> (i32, i32, i32) {
    %c0_i32 = arith.constant 0 : i32
    %c0_i32_0 = arith.constant 0 : i32
    return %arg0, %c0_i32, %arg1 : i32, i32, i32
  }
}

</mosaic_0001>

<bundles_post_ra>
// kernel: tpu_custom_call.1
= control target key start
LH: loop header
LB: loop body
LE: loop exit
PB: predicated region body
PF: predicated region fallthrough
CT: control target
= control target key end

     0   :  { %9 = vsyncpa [#allocation3], 0  ;;  %s1019_s0 = inlined_call_operand.hbm [shape: f32[2,8,32], index: 0, kind: input, shape index: {}]   ;;  %s1020_s1 = inlined_call_operand.hbm [shape: f32[32,32], index: 1, kind: input, shape index: {}]   ;;  %s1021_s2 = inlined_call_operand.vmem [shape: f32[2,1,32], index: 2, kind: input, shape index: {}]   ;;  %s1022_s3 = inlined_call_operand.vmem [shape: f32[1,32], index: 3, kind: input, shape index: {}]   ;;  %s1023_s4 = inlined_call_operand.hbm [shape: f32[2,1,8], index: 4, kind: output, shape index: {}]  }
   0x1   :  { %11 = vsyncpa [#allocation3 + $0x1], 0 }
   0x2   :  { %12 = vsyncpa [#allocation6], 0 }
   0x3   :  { %13 = vsyncpa [#allocation4], 0 }
   0x4   :  { %15 = vsyncpa [#allocation4 + $0x1], 0  ;;  %s796_s15 = smov 0   ;;  %s798_s16 = smov 0  }
   0x5   :  { %s800_s17 = smov 0   ;;  %s802_s18 = smov 0  }
   0x6   :  { %s804_s19 = smov 0   ;;  %s806_s20 = smov 0  }
   0x7 LB: > { %s499_s21 = sadd.s32 4294967295, %s761_s20   ;;  %s500_s22 = sadd.s32 4294967294, %s761_s20   ;;  %s761_s20 = sphi %s806_s20, %s21_s20   ;;  %s757_s19 = sphi %s804_s19, %s1047_s19   ;;  %s753_s18 = sphi %s802_s18, %s1046_s18   ;;  %s749_s17 = sphi %s800_s17, %s1045_s17   ;;  %s745_s16 = sphi %s798_s16, %s1044_s16   ;;  %s741_s15 = sphi %s796_s15, %s1043_s15  }
   0x8   : > { %p55_p0 = scmp.ne.s32.totalorder %s745_s16, %s741_s15  ;;  %p830_p1 = scmp.eq.s32.totalorder %s499_s21, 0 }
   0x9   : > { %p834_p2 = scmp.eq.s32.totalorder %s499_s21, 1  ;;  %p155_p3 = scmp.eq.s32.totalorder %s500_s22, 1 }
   0xa   : > { %s1028_s23 = scalar_select %p830_p1, 1, 0 }
   0xb   : > { %s1029_s24 = scalar_select %p834_p2, 1, 0 }
   0xc   : > { %p840_p4 = por %p830_p1, %p55_p0  ;;  %p501_p5 = scmp.ge.s32.totalorder %s761_s20, 1 }
   0xd   : > { %p845_p6 = por %p155_p3, %p55_p0  ;;  %p162_p7 = scmp.lt.s32.totalorder %s761_s20, 3 }
   0xe   : > { %s1030_s25 = scalar_select %p840_p4, 1, 0 }
   0xf   : > { %s1031_s26 = scalar_select %p845_p6, 1, 0 }
  0x10   : > { %p850_p8 = pnand %p501_p5, %p162_p7  ;;  %s763_s28 = smov [#allocation5]  }
  0x11   : > { %s174_s29 = sshll.u32 %s763_s28, 4  ;;  %s33_s5 = sadd.s32 1, %s757_s19  ;;  %s175_s29 = int_to_ptr.vmem [resolvable:$true] %s174_s29 }
  0x12   : > { %s1032_s27 = scalar_select %p850_p8, 1, 0 }
  0x13   : > { %p545_p9 = pneg %p850_p8  ;;  %s617_s8 = scalar_lea.hbm %s1020_s1, 512 }
  0x14   : > { %p618_p12 = scmp.ne.s32.totalorder %s1020_s1, %s617_s8  ;;  %p624_p5 = scmp.lt.u32.totalorder %s617_s8, %s1020_s1 }
  0x15   : > { %p859_p11 = pnand %p545_p9, %p830_p1 }
  0x17   : > { %p619_p13 = pneg %p859_p11 }
  0x19   : > { %p620_p0 = pnand %p619_p13, %p618_p12 }
  0x1b   : > { %p621_p3 = pneg %p620_p0 }
  0x1d   : > { %p626_p7 = pnand %p624_p5, %p621_p3 }
  0x1f   : > { %629 = shalt.err (!%p626_p7)
}
  0x20   : > { %s630_s13 = scalar_lea.vmem %s175_s29, 512  ;;  %p638_p1 = scmp.lt.s32.totalorder %s175_s29, %s175_s29 }
  0x21   : > { %p631_p9 = scmp.ne.s32.totalorder %s175_s29, %s630_s13  ;;  %p639_p4 = scmp.lt.s32.totalorder %s630_s13, %s630_s13 }
  0x23   : > { %p633_p10 = pnand %p631_p9, %p619_p13  ;;  %p640_p8 = por %p639_p4, %p638_p1 }
  0x25   : > { %p634_p6 = pneg %p633_p10 }
  0x27   : > { %p641_p2 = pnand %p640_p8, %p634_p6 }
  0x29   : > { %644 = shalt.err (!%p641_p2)
}
  0x2a   : > { %s764_s14 = smov 128   ;;  %s765_s21 = smov 8  }
  0x2b   : > { %548 = dma.hbm_to_vmem [thread:$0]  (!%p859_p11), %s1020_s1, 512, %s175_s29, [#allocation6], %s764_s14, %s764_s14, %s765_s21  }
  0x2c   : > { %p35_p1 = scmp.ge.s32.totalorder %s33_s5, 2  ;;  %s42_s6 = sadd.s32 1, %s749_s17 }
  0x2d   : > { %p49_p2 = scmp.ne.s32.totalorder %s749_s17, %s745_s16  ;;  %p50_p4 = scmp.eq.s32.totalorder %s761_s20, 0 }
  0x2e   : > { %s1049_s5 = smov (%p35_p1, %s33_s5), 0  ;;  %p1035_p8 = scmp.ne.s32.totalorder %s1029_s24, 0 }
  0x2f   : > { %p886_p6 = por %p50_p4, %p49_p2  ;;  %s37_s30 = ssub.s32 %s757_s19, %s1049_s5 }
  0x30   : > { %p892_p10 = por %p1035_p8, %p49_p2  ;;  %p558_p12 = scmp.lt.s32.totalorder %s761_s20, 2 }
  0x31   : > { %p40_p11 = scmp.eq.s32.totalorder %s37_s30, 0  ;;  %s191_s29 = sand.u32 1, %s749_s17  }
  0x32   : > { %s504_s9 = sshll.u32 %s191_s29, 3  ;;  %s505_s11 = sshll.u32 %s757_s19, 7 }
  0x33   : > { %s901_s10 = scalar_select %p40_p11, %s749_s17, %s42_s6  }
  0x34   : > { %s907_s14 = scalar_lea.hbm %s1019_s0, %s505_s11  ;;  %s195_s24 = scalar_lea.vmem [#allocation2], %s504_s9 }
  0x35   : > { %s203_s21 = sshll.u32 %s195_s24, 4  ;;  %p913_p13 = pnand %p558_p12, %p886_p6  ;;  %s909_s21 = int_to_ptr.vmem [resolvable:$true] %s203_s21 }
  0x36   : > { %s192_s28 = scalar_lea.sflag [#allocation3], %s191_s29  ;;  %s645_s6 = scalar_lea.hbm %s907_s14, 128 }
  0x37   : > { %p646_p0 = scmp.ne.s32.totalorder %s907_s14, %s645_s6  ;;  %p647_p3 = pneg %p913_p13 }
  0x38   : > { %s650_s11 = scalar_lea.hbm %s1019_s0, 256  ;;  %p651_p9 = scmp.lt.u32.totalorder %s907_s14, %s1019_s0 }
  0x39   : > { %p648_p5 = pnand %p647_p3, %p646_p0  ;;  %p652_p1 = scmp.lt.u32.totalorder %s650_s11, %s645_s6 }
  0x3a   : > { %p654_p4 = scmp.lt.u32.totalorder %s645_s6, %s907_s14 }
  0x3b   : > { %p649_p7 = pneg %p648_p5  ;;  %p653_p2 = por %p652_p1, %p651_p9 }
  0x3d   : > { %p655_p6 = por %p654_p4, %p653_p2 }
  0x3f   : > { %p656_p8 = pnand %p655_p6, %p649_p7 }
  0x41   : > { %659 = shalt.err (!%p656_p8)
}
  0x42   : > { %s660_s29 = scalar_lea.vmem %s909_s21, 128  ;;  %s766_s13 = smov [#allocation2]  }
  0x43   : > { %p661_p12 = scmp.ne.s32.totalorder %s909_s21, %s660_s29  ;;  %s665_s24 = sshll.u32 %s766_s13, 4  ;;  %s666_s24 = int_to_ptr.vmem [resolvable:$false] %s665_s24 }
  0x44   : > { %s667_s30 = scalar_lea.vmem %s666_s24, 256  ;;  %p668_p5 = scmp.lt.s32.totalorder %s909_s21, %s666_s24 }
  0x45   : > { %p663_p11 = pnand %p661_p12, %p647_p3  ;;  %p669_p9 = scmp.lt.s32.totalorder %s667_s30, %s660_s29 }
  0x47   : > { %p664_p0 = pneg %p663_p11  ;;  %p670_p1 = por %p669_p9, %p668_p5 }
  0x49   : > { %p671_p2 = pnand %p670_p1, %p664_p0 }
  0x4b   : > { %674 = shalt.err (!%p671_p2)
}
  0x4c   : > { %552 = dma.hbm_to_vmem [thread:$0]  (!%p913_p13), %s907_s14, 128, %s909_s21, %s192_s28  }
  0x4d   : > { %p1038_p7 = scmp.ne.s32.totalorder %s1032_s27, 0 }
  0x4e   : > { %s945_s6 = sand.u32 (!%p1038_p7), 1, %s745_s16   ;;  %p1039_p3 = scmp.ne.s32.totalorder (!%p1038_p7), %s1030_s25, 0 }
  0x4f   : > { %218 = sbr.rel (%p1038_p7) target bundleno = 614 (0x266), region = 36  ;;  %s507_s9 = sshll.u32 (!%p1038_p7), %s945_s6, 3 }
  0x50   : > { %s221_s11 = scalar_lea.sflag (!%p1038_p7), [#allocation3], %s945_s6  ;;  %s224_s7 = scalar_lea.vmem (!%p1038_p7), [#allocation2], %s507_s9 }
  0x56   : > { %728 = dma.done.wait (%p1039_p3), %s221_s11, 128  }
  0x57   : > { %730 = vsyncadd (%p1039_p3), %s221_s11, 4294967168  ;;  %p1040_p4 = scmp.ne.s32.totalorder %s1028_s23, 0 }
  0x59   : > { %732 = dma.done.wait (%p1040_p4), [#allocation6], 512  }
  0x5a   : > { %734 = vsyncadd (%p1040_p4), [#allocation6], 4294966784  ;;  %v767_v0 = vmov 0.0|0.0   ;;  %vm768_vm0 = vmmov 0   ;;  %v769_v1 = vmov 0.0   ;;  %v259_v2 = vld [vmem:[#allocation5] sm:$0xff] }
  0x5b   : > { %531 = vmatprep.subr.bf16.mxu0 %v767_v0  ;;  %528 = vmatprep.mubr.msk.f32.mxu0 %vm768_vm0, %v769_v1  ;;  %v260_v3 = vld [vmem:[#allocation5 + $0x8] sm:$0xff]  ;;  %v261_v4 = vld [vmem:[#allocation5 + $0x10] sm:$0xff]  ;;  %v262_v6 = vld [vmem:[#allocation5 + $0x18] sm:$0xff]  ;;  %vm270_vm1 = vcmask 261120   ;;  %p255_p13 = scmp.lt.s32.totalorder %s753_s18, 1  ;;  %s512_s28 = sshll.u32 %s753_s18, 4 }
  0x5c   : > { %v532_v5 = vpack.c.bf16 %v260_v3, %v259_v2  ;;  %v535_v7 = vpack.c.bf16 %v262_v6, %v261_v4  ;;  %v258_v8 = vld [vmem:[%s224_s7] sm:$0xff]  ;;  %s254_s12 = scalar_lea.vmem [#allocation7], %s945_s6  ;;  %vm388_vm2 = vcmask 57344   ;;  %s970_s30 = scalar_lea.hbm %s1023_s4, %s512_s28 }
  0x5d   : > { %s256_s23 = scalar_select %p255_p13, %s753_s18, 1  ;;  %v511_v13 = vld [vmem:[%s1022_s3] ss:$0 sm:$0xff] }
  0x5e   : > { %533 = vmatpush3.bf16.msra.mxu0 %v532_v5  ;;  %s404_s29 = sshll.u32 %s254_s12, 4  ;;  %s391_s9 = scalar_lea.sflag [#allocation4], %s945_s6  ;;  %s972_s29 = int_to_ptr.vmem [resolvable:$true] %s404_s29 }
  0x5f   : > { %534 = vmatprep.subr.bf16.mxu0 %v767_v0  ;;  %s257_s14 = scalar_lea.vmem %s1021_s2, %s256_s23  ;;  %s675_s11 = scalar_lea.vmem %s972_s29, 16 }
  0x60   : > { %v509_v9 = vld [vmem:[%s257_s14] ss:$0 sm:$0xff]  ;;  %p676_p6 = scmp.ne.s32.totalorder %s972_s29, %s675_s11  ;;  %s770_s18 = smov [#allocation7]  }
  0x61   : > { %s679_s7 = sshll.u32 %s770_s18, 4  ;;  %s680_s7 = int_to_ptr.vmem [resolvable:$false] %s679_s7 }
  0x62   : > { %536 = vmatpush3.bf16.msra.mxu0 %v535_v7  ;;  %p677_p8 = pnand %p676_p6, %p892_p10  ;;  %s681_s23 = scalar_lea.vmem %s680_s7, 32 }
  0x63   : > { %p682_p11 = scmp.lt.s32.totalorder %s972_s29, %s680_s7  ;;  %p683_p0 = scmp.lt.s32.totalorder %s681_s23, %s675_s11 }
  0x64   : > { %p678_p12 = pneg %p677_p8 }
  0x65   : > { %529 = vmatmul.mubr.msk.f32.vlgmr.msra.gmra.mrb[0].mxu0 %vm270_vm1, %v258_v8  ;;  %p684_p5 = por %p683_p0, %p682_p11 }
  0x67   : > { %p685_p9 = pnand %p684_p5, %p678_p12 }
 0x138   : > { %v340_v10 = vpop.f32.mrb[0].mxu0 }
 0x139   : > { %v341_v11 = vadd.f32 %v509_v9, %v340_v10  ;;  %v530_v12 = vpop.f32.mrb[1].mxu0 }
 0x13b   : > { %615 = vtanh.f32 %v341_v11 }
 0x145   : > { %v616_v14 = vpop.eup %615 }
 0x146   : > { %v352_v15 = vmul.f32 %v616_v14, %v511_v13 }
 0x148   : > { %v353_v16 = vsel %vm270_vm1, %v352_v15, 0.0 }
 0x149   : > { %354 = vadd.xlane.f32.xlu0 %v353_v16 }
 0x1d6   : > { %v355_v17 = vpop.xlane.xlu0 %354 }
 0x1d7   : > { %356 = vxpose.xlu0.b32.start.end [1/1] (short) (narrow) %v355_v17, 8 }
 0x257   : > { %v372_v18 = vpop.trf.xlu0 }
 0x258   : > { %389 = vst.msk [vmem:[%s254_s12] sm:$0x1] %vm388_vm2, %v372_v18 }
 0x259   : > { %688 = shalt.err (!%p685_p9)
}
 0x25a   : > { %s689_s6 = scalar_lea.hbm %s970_s30, 16  ;;  %s693_s14 = scalar_lea.hbm %s1023_s4, 32 }
 0x25b   : > { %p690_p1 = scmp.ne.s32.totalorder %s970_s30, %s689_s6  ;;  %p694_p3 = scmp.lt.u32.totalorder %s970_s30, %s1023_s4 }
 0x25c   : > { %p695_p4 = scmp.lt.u32.totalorder %s693_s14, %s689_s6  ;;  %p697_p6 = scmp.lt.u32.totalorder %s689_s6, %s970_s30 }
 0x25d   : > { %p691_p2 = pnand %p690_p1, %p892_p10 }
 0x25e   : > { %p696_p13 = por %p695_p4, %p694_p3 }
 0x25f   : > { %p692_p7 = pneg %p691_p2 }
 0x260   : > { %p698_p8 = por %p697_p6, %p696_p13 }
 0x262   : > { %p699_p12 = pnand %p698_p8, %p692_p7 }
 0x264   : > { %702 = shalt.err (!%p699_p12)
}
 0x265   : > { %543 = dma.vmem_to_hbm [thread:$0]  (%p892_p10), %s972_s29, 16, %s970_s30, %s391_s9  }
 0x266 PF: > { %s416_s28 = sand.u32 1, %s741_s15   ;;  %p1041_p11 = scmp.ne.s32.totalorder %s1031_s26, 0 }
 0x267   : > { %p1042_p0 = scmp.ge.s32.totalorder %s761_s20, 2  ;;  %s417_s12 = scalar_lea.sflag [#allocation4], %s416_s28 }
 0x269   : > { %p554_p5 = pnand %p1042_p0, %p1041_p11 }
 0x26b   : > { %736 = dma.done.wait (!%p554_p5), %s417_s12, 16  }
 0x26c   : > { %738 = vsyncadd (!%p554_p5), %s417_s12, 4294967280  ;;  %s21_s20 = sadd.s32 1, %s761_s20   ;;  %s1043_s15 = smov %s745_s16 }
 0x26d   : > { %p18_p9 = scmp.ge.s32.totalorder %s21_s20, 4   ;;  %s1044_s16 = smov %s749_s17 }
 0x26e   : > { %s1045_s17 = smov %s901_s10  ;;  %s1046_s18 = smov %s757_s19 }
 0x26f   : > { %s1047_s19 = smov %s1049_s5  ;;  %20 = sbr.rel (!%p18_p9) target bundleno = 7 (0x7), region = 88 }
 0x276   :  { %421 = vsyncpa [#allocation3], 1 }
 0x277   :  { %423 = vsyncpa [#allocation3 + $0x1], 1 }
 0x278   :  { %424 = vsyncpa [#allocation6], 1 }
 0x279   :  { %425 = vsyncpa [#allocation4], 1 }
 0x27a   :  { %427 = vsyncpa [#allocation4 + $0x1], 1 }

</bundles_post_ra>
